<compile_context>
chip_gen: v7x
topology: tpu7x:2x2x1
jax: 0.10.0
libtpu: 0.0.40
codegen_flags: <defaults>
</compile_context>

<pallas_src>
import functools

import jax
import jax.numpy as jnp
from jax.experimental import pallas as pl
from jax.experimental.pallas import tpu as pltpu

LANES = 128       # lane width of a vreg / VMEM tile
SUBLANES = 8      # sublane granularity for f32


def _round_up(x, m):
    return ((x + m - 1) // m) * m


# ----------------------------------------------------------------------------
# Chip detection / budgets (defensive: any failure falls back to safe values).
# ----------------------------------------------------------------------------
def _chip_info():
    """Best-effort (physical_vmem_bytes, is_multi_tensorcore_chip)."""
    vmem_bytes = 64 << 20          # conservative default: v7x has the smallest VMEM
    multi_core = False
    try:
        info = pltpu.get_tpu_info()
        vmem_bytes = int(info.vmem_capacity_bytes)
    except Exception:
        pass
    try:
        # v7x exposes 2 TensorCores per chip; v5e/v6e have 1.
        multi_core = "7" in jax.devices()[0].device_kind
    except Exception:
        pass
    return vmem_bytes, multi_core


def _vmem_limit_bytes(vmem_bytes):
    # Leave ~16 MiB of physical VMEM for Mosaic internals / neighbours and
    # never ask for more than ~100 MiB even on 128 MiB chips.
    #   v7x (64 MiB)      -> 48 MiB
    #   v5e/v6e (128 MiB) -> 100 MiB
    return int(min(max(vmem_bytes - (16 << 20), 32 << 20), 100 << 20))


def _pick_row_tile(num_rows, x_lane_cols, out_lane_cols, itemsize, vmem_limit,
                   forced=None, extra_bytes_per_row=0):
    """Largest (sublane) row tile whose double-buffered VMEM footprint fits.

    x_lane_cols / out_lane_cols are *lane-padded* widths: a (tb, c) block
    occupies round_up(c, 128) lanes per row in VMEM regardless of c.
    """
    max_rows = _round_up(num_rows, SUBLANES)
    if forced is not None:
        return int(min(max(SUBLANES, _round_up(int(forced), SUBLANES)), max_rows))
    budget = max(vmem_limit - (6 << 20), 4 << 20)          # slack for weight slabs etc.
    per_row = 2 * (x_lane_cols + out_lane_cols) * itemsize + extra_bytes_per_row
    rows = budget // per_row
    rows = min(rows, max_rows)
    rows = max(SUBLANES, (rows // SUBLANES) * SUBLANES)
    return int(rows)


def _row_semantics(multi_core, num_row_tiles):
    # Batch tiles are fully independent.  On v7x split them across the two
    # TensorCores with CORE_PARALLEL; keep PARALLEL as a fallback in case this
    # jax/chip combination rejects it (a kernel that does not run is worthless).
    core_parallel = getattr(pltpu, "CORE_PARALLEL", None)
    if multi_core and core_parallel is not None and num_row_tiles % 2 == 0:
        return (core_parallel, pltpu.PARALLEL)
    return (pltpu.PARALLEL,)


def _call_with_fallback(build, row_semantics, *args):
    err = None
    for sem in row_semantics:
        try:
            return build(sem)(*args)
        except Exception as e:        # defensive: fall back rather than crash
            err = e
    raise err


# ----------------------------------------------------------------------------
# General path: any F.  Grid = (row_tiles, feature_tiles); feature axis is a
# reduction ("arbitrary", last) accumulated in an f32 VMEM scratch.
# ----------------------------------------------------------------------------
def _logreg_general_kernel(x_ref, w_ref, b_ref, o_ref, acc_ref, *,
                           n_features, block_features):
    """x_ref: (TB, TF) VMEM   w_ref: (1, TF) VMEM   b_ref: (1,) SMEM
       o_ref: (TB, 1) VMEM    acc_ref: (TB, 1) f32 VMEM scratch."""
    k = pl.program_id(1)

    @pl.when(k == 0)
    def _():
        acc_ref[...] = jnp.zeros_like(acc_ref)

    # N=1 "matmul" on the VPU (multiply) + XLU (lane reduction): no per-tile
    # weight transpose, no near-empty MXU pass.  Accumulate in f32 even for
    # bf16 inputs - free, the kernel is HBM-bandwidth-bound.
    x = x_ref[...].astype(jnp.float32)
    w = w_ref[...].astype(jnp.float32)
    p = x * w
    if n_features % block_features != 0:
        # Mask the padded tail of the last (partial) feature block so stale
        # VMEM columns never reach the accumulator.
        col = k * block_features + jax.lax.broadcasted_iota(jnp.int32, p.shape, 1)
        p = jnp.where(col < n_features, p, 0.0)
    acc_ref[...] += jnp.sum(p, axis=-1, keepdims=True)

    @pl.when(k == pl.num_programs(1) - 1)
    def _():
        z = acc_ref[...] + b_ref[0]
        # Exact sigmoid: exp on the EUP, one VPU divide (HBM-bound -> free).
        o_ref[...] = (1.0 / (1.0 + jnp.exp(-z))).astype(o_ref.dtype)


def _general_path(x, weight, bias, vmem_limit, multi_core, tile_rows, tile_features):
    batch, n_features = x.shape
    itemsize = jnp.dtype(x.dtype).itemsize
    f_padded = _round_up(n_features, LANES)

    x_budget = max(vmem_limit - (6 << 20), 4 << 20)
    r_min = 256   # don't let huge F force degenerate 8-row tiles; split F instead
    if tile_features is not None:
        tf = int(tile_features)
        if tf != n_features and tf % LANES != 0:
            raise ValueError("tile_features must be a multiple of 128 or == n_features")
    elif f_padded <= LANES or 2 * r_min * f_padded * itemsize <= x_budget:
        tf = n_features                      # whole feature dim resident per tile
    else:
        tf = max(LANES, (x_budget // (2 * r_min * itemsize)) // LANES * LANES)
        tf = min(tf, f_padded)
    tf_lanes = _round_up(tf, LANES)
    num_f_tiles = pl.cdiv(n_features, tf)

    # Row tile sized by bytes (double-buffered x + lane-padded output + acc).
    tb = _pick_row_tile(batch, tf_lanes, LANES, itemsize, vmem_limit,
                        forced=tile_rows, extra_bytes_per_row=LANES * 4)
    grid = (pl.cdiv(batch, tb), num_f_tiles)

    needed = (2 * tb * (tf_lanes + LANES) * itemsize      # x + padded out, 2 buffers
              + tb * LANES * 4                            # f32 accumulator scratch
              + 2 * SUBLANES * tf_lanes * itemsize        # weight slab, 2 buffers
              + (2 << 20))
    vmem_request = int(min(vmem_limit, max(needed, 32 << 20)))

    cost = pl.CostEstimate(
        flops=2 * batch * n_features,
        transcendentals=batch,
        bytes_accessed=int((batch * n_features + n_features + batch) * itemsize))

    kernel = functools.partial(_logreg_general_kernel,
                               n_features=n_features, block_features=tf)

    def build(row_sem):
        return pl.pallas_call(
            kernel,
            out_shape=jax.ShapeDtypeStruct((batch, 1), x.dtype),
            grid=grid,
            in_specs=[
                pl.BlockSpec((tb, tf), lambda i, k: (i, k)),         # x (pipelined)
                pl.BlockSpec((1, tf), lambda i, k: (0, k)),          # weight slab
                pl.BlockSpec(memory_space=pltpu.MemorySpace.SMEM),   # bias scalar
            ],
            # The (tb, 1) output block is lane-padded to 128 in VMEM (accounted
            # for above); at F >= 128 output traffic is <= 1/128 of the input
            # so the masked store is noise.  F < 128 uses the packed path.
            out_specs=pl.BlockSpec((tb, 1), lambda i, k: (i, 0)),
            scratch_shapes=[pltpu.VMEM((tb, 1), jnp.float32)],
            compiler_params=pltpu.CompilerParams(
                dimension_semantics=(row_sem, pltpu.ARBITRARY),
                vmem_limit_bytes=vmem_request),
            cost_estimate=cost,
        )

    # NOTE: rows of a partial last batch tile are computed on stale padding and
    # discarded on writeback - fine as long as no cross-row reduction is added.
    sems = _row_semantics(multi_core, grid[0])
    return _call_with_fallback(build, sems, x, weight, bias)


# ----------------------------------------------------------------------------
# Lane-packed path: F < 128 and F | 128.  x is viewed as (B*F/128, 128) so the
# HBM->VMEM DMA is lane-dense (no 4x lane padding / strided bursts), and the
# per-sample segmented reduction is one small matmul against a block-diagonal
# packed weight built in the wrapper.
# ----------------------------------------------------------------------------
def _logreg_packed_kernel(x_ref, w_ref, b_ref, o_ref):
    """x_ref: (TBR, 128) VMEM  w_ref: (128, G) VMEM  b_ref: (1,) SMEM  o_ref: (TBR, G)."""
    # HBM-bound: the tiny-N MXU pass is hidden behind the x DMA.
    z = jnp.dot(x_ref[...].astype(jnp.float32), w_ref[...],
                preferred_element_type=jnp.float32)
    z = z + b_ref[0]
    o_ref[...] = (1.0 / (1.0 + jnp.exp(-z))).astype(o_ref.dtype)


def _packed_path(x, weight, bias, vmem_limit, multi_core, tile_rows):
    batch, n_features = x.shape
    itemsize = jnp.dtype(x.dtype).itemsize
    group = LANES // n_features                   # samples per 128-lane row
    rows = batch // group
    x2d = x.reshape(rows, LANES)                  # free: x is row-major contiguous

    # Block-diagonal packed weight (128, group): column g holds w in lanes
    # [g*F, (g+1)*F), so (x2d @ w2)[r, g] = <x[r*group + g, :], w>.
    w_flat = jnp.tile(weight.reshape(-1).astype(jnp.float32), group)     # (128,)
    seg = jnp.arange(LANES) // n_features
    w2 = w_flat[:, None] * (seg[:, None] == jnp.arange(group)[None, :]).astype(jnp.float32)

    tbr = _pick_row_tile(rows, LANES, _round_up(group, LANES), itemsize,
                         vmem_limit, forced=tile_rows)
    grid = (pl.cdiv(rows, tbr),)

    needed = (2 * tbr * (LANES + _round_up(group, LANES)) * itemsize
              + 2 * LANES * LANES * 4 + (2 << 20))
    vmem_request = int(min(vmem_limit, max(needed, 32 << 20)))

    cost = pl.CostEstimate(
        flops=2 * batch * n_features,
        transcendentals=batch,
        bytes_accessed=int((batch * n_features + LANES * group + batch) * itemsize))

    def build(row_sem):
        return pl.pallas_call(
            _logreg_packed_kernel,
            out_shape=jax.ShapeDtypeStruct((rows, group), x.dtype),
            grid=grid,
            in_specs=[
                pl.BlockSpec((tbr, LANES), lambda i: (i, 0)),         # packed x (pipelined)
                pl.BlockSpec((LANES, group), lambda i: (0, 0)),       # packed weight (resident)
                pl.BlockSpec(memory_space=pltpu.MemorySpace.SMEM),    # bias scalar
            ],
            out_specs=pl.BlockSpec((tbr, group), lambda i: (i, 0)),
            compiler_params=pltpu.CompilerParams(
                dimension_semantics=(row_sem,),
                vmem_limit_bytes=vmem_request),
            cost_estimate=cost,
        )

    sems = _row_semantics(multi_core, grid[0])
    out2d = _call_with_fallback(build, sems, x2d, w2, bias)
    return out2d.reshape(batch, 1)


# ----------------------------------------------------------------------------
# Public wrapper (forward pass of the PyTorch module).
# ----------------------------------------------------------------------------
def logistic_regression(x, weight, bias, *, tile_rows=None, tile_features=None,
                        allow_lane_packing=True):
    """sigmoid(x @ weight.T + bias).  x: [B, F], weight: [1, F], bias: [1] -> [B, 1].

    tile_rows:     rows of the (possibly lane-packed) x view per grid step
                   (testing/override only; auto-sized from VMEM otherwise).
    tile_features: feature-slab width for the general path (multiple of 128 or F).
    """
    batch, n_features = x.shape
    vmem_bytes, multi_core = _chip_info()
    vmem_limit = _vmem_limit_bytes(vmem_bytes)

    packed_ok = (allow_lane_packing
                 and 0 < n_features < LANES
                 and LANES % n_features == 0
                 and batch % (LANES // n_features) == 0)
    if packed_ok:
        return _packed_path(x, weight, bias, vmem_limit, multi_core, tile_rows)
    return _general_path(x, weight, bias, vmem_limit, multi_core,
                         tile_rows, tile_features)


if __name__ == "__main__":
    key = jax.random.PRNGKey(0)
    k_x1, k_x2, k_x3, k_x4, k_w1, k_b1, k_w3, k_b3, k_w4, k_b4 = jax.random.split(key, 10)

    def make_params(n_features, kw, kb):
        # PyTorch nn.Linear default init: U(-1/sqrt(F), 1/sqrt(F)).
        bound = 1.0 / (n_features ** 0.5)
        w = jax.random.uniform(kw, (1, n_features), minval=-bound, maxval=bound,
                               dtype=jnp.float32)
        b = jax.random.uniform(kb, (1,), minval=-bound, maxval=bound,
                               dtype=jnp.float32)
        return w, b

    def reference(x, w, b):
        return jax.nn.sigmoid(
            jnp.dot(x, w.T, precision=jax.lax.Precision.HIGHEST) + b)

    # 1) F=32: lane-packed path, single tile.
    f = 32
    w, b = make_params(f, k_w1, k_b1)
    x = jax.random.normal(k_x1, (8, f), dtype=jnp.float32)
    out = jax.block_until_ready(logistic_regression(x, w, b))
    assert out.shape == (8, 1)
    # MXU f32 matmul may use bf16 passes at default precision -> modest tol.
    assert jnp.allclose(out, reference(x, w, b), atol=2e-3), "packed single-tile"

    # 2) F=32: lane-packed path, multi-tile grid (forced small row tile).
    x = jax.random.normal(k_x2, (64, f), dtype=jnp.float32)
    out = jax.block_until_ready(logistic_regression(x, w, b, tile_rows=8))
    assert out.shape == (64, 1)
    assert jnp.allclose(out, reference(x, w, b), atol=2e-3), "packed multi-tile"

    # 3) F=48 (does not divide 128): general VPU-reduction path, single F slab.
    f = 48
    w, b = make_params(f, k_w3, k_b3)
    x = jax.random.normal(k_x3, (16, f), dtype=jnp.float32)
    out = jax.block_until_ready(logistic_regression(x, w, b))
    assert out.shape == (16, 1)
    assert jnp.allclose(out, reference(x, w, b), atol=1e-5, rtol=1e-5), "general path"

    # 4) F=512 with a forced feature split: exercises the "arbitrary" reduction
    #    axis, the f32 accumulator and the pl.when init/finalize.
    f = 512
    w, b = make_params(f, k_w4, k_b4)
    x = jax.random.normal(k_x4, (24, f), dtype=jnp.float32)
    out = jax.block_until_ready(
        logistic_regression(x, w, b, tile_rows=8, tile_features=256))
    assert out.shape == (24, 1)
    assert jnp.allclose(out, reference(x, w, b), atol=1e-5, rtol=1e-5), "F-split path"

    print("KERNEL_OK")
</pallas_src>

<mosaic_0001>
module attributes {stable_mosaic.version = 11 : i64} {
  func.func @_logreg_packed_kernel(%arg0: i32, %arg1: memref<8x128xf32, #tpu.memory_space<vmem>>, %arg2: memref<128x4xf32, #tpu.memory_space<vmem>>, %arg3: memref<1xf32, #tpu.memory_space<smem>>, %arg4: memref<8x4xf32, #tpu.memory_space<vmem>>) attributes {dimension_semantics = [#tpu.dimension_semantics<parallel>], iteration_bounds = array<i64: 1>, scalar_prefetch = 0 : i64, scratch_operands = 0 : i64, tpu.core_type = #tpu.core_type<tc>, window_params = [{transform_indices = @transform_0, window_bounds = array<i64: 8, 128>}, {pipeline_mode = #tpu.pipeline_mode<synchronous>, transform_indices = @transform_1, window_bounds = array<i64: 128, 4>}, {transform_indices = @transform_2, window_bounds = array<i64: 1>}, {transform_indices = @transform_3, window_bounds = array<i64: 8, 4>}]} {
    %c0 = arith.constant 0 : index
    %c0_0 = arith.constant 0 : index
    %0 = vector.load %arg1[%c0, %c0_0] : memref<8x128xf32, #tpu.memory_space<vmem>>, vector<8x128xf32>
    %c0_1 = arith.constant 0 : index
    %c0_2 = arith.constant 0 : index
    %1 = vector.load %arg2[%c0_1, %c0_2] : memref<128x4xf32, #tpu.memory_space<vmem>>, vector<128x4xf32>
    %cst = arith.constant dense<0.000000e+00> : vector<8x4xf32>
    %2 = tpu.matmul %0, %1, %cst {dimension_numbers = #tpu.dot_dimension_numbers<[1], [0], [0], [1], [0, 0, 1, 1], [], []>} : vector<8x128xf32>, vector<128x4xf32>, vector<8x4xf32> -> vector<8x4xf32>
    %c0_3 = arith.constant 0 : index
    %3 = memref.load %arg3[%c0_3] : memref<1xf32, #tpu.memory_space<smem>>
    %4 = vector.broadcast %3 : f32 to vector<8x4xf32>
    %5 = arith.addf %2, %4 : vector<8x4xf32>
    %cst_4 = arith.constant 0.000000e+00 : f32
    %6 = vector.broadcast %cst_4 : f32 to vector<8x4xf32>
    %7 = arith.subf %6, %5 : vector<8x4xf32>
    %8 = math.exp %7 : vector<8x4xf32>
    %cst_5 = arith.constant 1.000000e+00 : f32
    %9 = vector.broadcast %cst_5 : f32 to vector<8x4xf32>
    %10 = arith.addf %9, %8 : vector<8x4xf32>
    %cst_6 = arith.constant 1.000000e+00 : f32
    %11 = vector.broadcast %cst_6 : f32 to vector<8x4xf32>
    %12 = arith.divf %11, %10 : vector<8x4xf32>
    %c0_7 = arith.constant 0 : index
    %c0_8 = arith.constant 0 : index
    %13 = vector.load %arg4[%c0_7, %c0_8] : memref<8x4xf32, #tpu.memory_space<vmem>>, vector<8x4xf32>
    tpu.vector_store %arg4[%c0_7, %c0_8], %12 {strides = array<i32>} : memref<8x4xf32, #tpu.memory_space<vmem>>, vector<8x4xf32>,
    return
  }
  func.func @transform_0(%arg0: i32) -> (i32, i32) {
    %c0_i32 = arith.constant 0 : i32
    %c0_i32_0 = arith.constant 0 : i32
    return %arg0, %c0_i32 : i32, i32
  }
  func.func @transform_1(%arg0: i32) -> (i32, i32) {
    %c0_i32 = arith.constant 0 : i32
    %c0_i32_0 = arith.constant 0 : i32
    %c0_i32_1 = arith.constant 0 : i32
    return %c0_i32, %c0_i32_0 : i32, i32
  }
  func.func @transform_2(%arg0: i32) -> i32 {
    %c0_i32 = arith.constant 0 : i32
    %c0_i32_0 = arith.constant 0 : i32
    return %c0_i32 : i32
  }
  func.func @transform_3(%arg0: i32) -> (i32, i32) {
    %c0_i32 = arith.constant 0 : i32
    %c0_i32_0 = arith.constant 0 : i32
    return %arg0, %c0_i32 : i32, i32
  }
}

</mosaic_0001>

<bundles_post_ra>
// kernel: tpu_custom_call.1
= control target key start
LH: loop header
LB: loop body
LE: loop exit
PB: predicated region body
PF: predicated region fallthrough
CT: control target
= control target key end

     0   :  { %9 = vsyncpa [#allocation4], 0  ;;  %v239_v2 = vmov 0.0|0.0   ;;  %vm240_vm0 = vmmov 0   ;;  %v241_v6 = vmov 0.0   ;;  %vm111_vm1 = vcmask 31744   ;;  %s331_s0 = inlined_call_operand.vmem [shape: f32[2,128], index: 0, kind: input, shape index: {}]   ;;  %s332_s1 = inlined_call_operand.vmem [shape: f32[128,4], index: 1, kind: input, shape index: {}]   ;;  %s333_s2 = inlined_call_operand.<no memory space> [shape: f32[1], index: 2, kind: input, shape index: {}]   ;;  %s334_s3 = inlined_call_operand.hbm [shape: f32[2,4], index: 3, kind: output, shape index: {}]  }
   0x1   :  { %v17_v0 = vld [vmem:[%s332_s1] sm:$0xff]  ;;  %v18_v1 = vld [vmem:[%s332_s1 + $0x8] sm:$0xff]  ;;  %181 = vmatprep.subr.bf16.mxu0 %v239_v2  ;;  %v19_v4 = vld [vmem:[%s332_s1 + $0x10] sm:$0xff]  ;;  %178 = vmatprep.mubr.msk.f32.mxu0 %vm240_vm0, %v241_v6  ;;  %v34_v27 = vstv %s333_s2 }
   0x2   :  { %v182_v3 = vpack.c.bf16 %v18_v1, %v17_v0  ;;  %v20_v5 = vld [vmem:[%s332_s1 + $0x18] sm:$0xff]  ;;  %v21_v8 = vld [vmem:[%s332_s1 + $0x20] sm:$0xff]  ;;  %v22_v9 = vld [vmem:[%s332_s1 + $0x28] sm:$0xff] }
   0x3   :  { %v185_v7 = vpack.c.bf16 %v20_v5, %v19_v4  ;;  %v188_v10 = vpack.c.bf16 %v22_v9, %v21_v8  ;;  %v23_v11 = vld [vmem:[%s332_s1 + $0x30] sm:$0xff]  ;;  %v24_v12 = vld [vmem:[%s332_s1 + $0x38] sm:$0xff]  ;;  %v25_v14 = vld [vmem:[%s332_s1 + $0x40] sm:$0xff] }
   0x4   :  { %183 = vmatpush3.bf16.msra.mxu0 %v182_v3  ;;  %v191_v13 = vpack.c.bf16 %v24_v12, %v23_v11  ;;  %v26_v15 = vld [vmem:[%s332_s1 + $0x48] sm:$0xff]  ;;  %v27_v17 = vld [vmem:[%s332_s1 + $0x50] sm:$0xff]  ;;  %v28_v18 = vld [vmem:[%s332_s1 + $0x58] sm:$0xff] }
   0x5   :  { %184 = vmatprep.subr.bf16.mxu0 %v239_v2  ;;  %v194_v16 = vpack.c.bf16 %v26_v15, %v25_v14  ;;  %v197_v19 = vpack.c.bf16 %v28_v18, %v27_v17  ;;  %v29_v20 = vld [vmem:[%s332_s1 + $0x60] sm:$0xff]  ;;  %v30_v21 = vld [vmem:[%s332_s1 + $0x68] sm:$0xff]  ;;  %v31_v23 = vld [vmem:[%s332_s1 + $0x70] sm:$0xff] }
   0x6   :  { %v200_v22 = vpack.c.bf16 %v30_v21, %v29_v20  ;;  %v32_v24 = vld [vmem:[%s332_s1 + $0x78] sm:$0xff]  ;;  %v16_v26 = vld [vmem:[%s331_s0] sm:$0xff] }
   0x7   :  { %v203_v25 = vpack.c.bf16 %v32_v24, %v31_v23 }
   0x8   :  { %186 = vmatpush3.bf16.msra.mxu0 %v185_v7 }
   0x9   :  { %187 = vmatprep.subr.bf16.mxu0 %v239_v2 }
   0xc   :  { %189 = vmatpush3.bf16.msra.mxu0 %v188_v10 }
   0xd   :  { %190 = vmatprep.subr.bf16.mxu0 %v239_v2 }
  0x10   :  { %192 = vmatpush3.bf16.msra.mxu0 %v191_v13 }
  0x11   :  { %193 = vmatprep.subr.bf16.mxu0 %v239_v2 }
  0x14   :  { %195 = vmatpush3.bf16.msra.mxu0 %v194_v16 }
  0x15   :  { %196 = vmatprep.subr.bf16.mxu0 %v239_v2 }
  0x18   :  { %198 = vmatpush3.bf16.msra.mxu0 %v197_v19 }
  0x19   :  { %199 = vmatprep.subr.bf16.mxu0 %v239_v2 }
  0x1c   :  { %201 = vmatpush3.bf16.msra.mxu0 %v200_v22 }
  0x1d   :  { %202 = vmatprep.subr.bf16.mxu0 %v239_v2 }
  0x20   :  { %204 = vmatpush3.bf16.msra.mxu0 %v203_v25 }
  0x23   :  { %179 = vmatmul.mubr.f32.vlgmr.msra.gmra.mrb[0].mxu0 %v16_v26 }
  0xf6   :  { %v101_v28 = vpop.f32.mrb[0].mxu0 }
  0xf7   :  { %v102_v29 = vadd.f32 %v101_v28, %v34_v27  ;;  %v180_v30 = vpop.f32.mrb[1].mxu0 }
  0xf9   :  { %v105_v31 = vsub.f32 0.0, %v102_v29 }
  0xfb   :  { %v106_v32 = vmul.f32 1.442695, %v105_v31 }
  0xfd   :  { %211 = vpow2.f32 %v106_v32 }
 0x107   :  { %v212_v33 = vpop.eup %211 }
 0x108   :  { %v108_v34 = vadd.f32 1.0, %v212_v33 }
 0x10a   :  { %213 = vrcp.f32 %v108_v34 }
 0x114   :  { %v214_v35 = vpop.eup %213 }
 0x115   :  { %112 = vst.msk [vmem:[#allocation3] sm:$0xff] %vm111_vm1, %v214_v35 }
 0x116   :  { %117 = vsyncadd [#allocation4], 96  ;;  %s242_s1 = smov [#allocation3]  }
 0x117   :  { %s118_s0 = sshll.u32 %s242_s1, 4  ;;  %s119_s0 = int_to_ptr.vmem [resolvable:$true] %s118_s0 }
 0x118   :  { %s215_s21 = scalar_lea.vmem %s119_s0, 32  ;;  %s219_s22 = scalar_lea.vmem %s119_s0, 128 }
 0x119   :  { %p216_p0 = scmp.ne.s32.totalorder %s119_s0, %s215_s21  ;;  %p220_p1 = scmp.lt.s32.totalorder %s119_s0, %s119_s0 }
 0x11a   :  { %p221_p2 = scmp.lt.s32.totalorder %s219_s22, %s215_s21 }
 0x11c   :  { %p222_p3 = por %p221_p2, %p220_p1 }
 0x11e   :  { %p223_p4 = pnand %p222_p3, %p216_p0 }
 0x120   :  { %226 = shalt.err (!%p223_p4)
}
 0x121   :  { %s227_s24 = scalar_lea.hbm %s334_s3, 32 }
 0x122   :  { %p228_p5 = scmp.ne.s32.totalorder %s334_s3, %s227_s24  ;;  %p231_p6 = scmp.lt.u32.totalorder %s227_s24, %s334_s3 }
 0x124   :  { %p233_p7 = pnand %p231_p6, %p228_p5 }
 0x126   :  { %236 = shalt.err (!%p233_p7)
}
 0x127   :  { %s243_s29 = smov 32   ;;  %s244_s30 = smov 2  }
 0x128   :  { %124 = dma.vmem_to_hbm [thread:$0]  %s119_s0, 32, %s334_s3, [#allocation4], %s243_s29, %s243_s29, %s244_s30  }
 0x129   :  { %237 = dma.done.wait [#allocation4], 128  }
 0x12a   :  { %238 = vsyncadd [#allocation4], 4294967168 }
 0x12b   :  { %128 = vsyncpa [#allocation4], 1 }

</bundles_post_ra>
